<compile_context>
chip_gen: v7x
topology: tpu7x:2x2x1
jax: 0.10.0
libtpu: 0.0.40
codegen_flags: <defaults>
</compile_context>

<pallas_src>
import jax
import jax.numpy as jnp
from jax.experimental import pallas as pl
from jax.experimental.pallas import tpu as pltpu

INPUT_SIZE = 24
HIDDEN_SIZE = 48
OUTPUT_SIZE = 6
BATCH = 8

LANE = 128                       # lane-padded feature width for hidden/output
PACK = 3 * LANE                  # 3 layers packed along the lane axis
BIAS_ROW = LANE                  # biases live in row 128 of the packed buffer
PACK_ROWS = LANE + 8             # 136 = 128 weight rows + bias row + 7 zero rows
MAX_TB = 512                     # batch-tile cap (DMA / per-step-overhead sweet spot)
SMALL_BATCH = 64                 # below this, plain XLA beats kernel dispatch cost


def _round_up(x, m):
    return ((x + m - 1) // m) * m


def mlp_kernel(x_ref, w_ref, o_ref):
    """Fused 3-layer MLP. All operands are f32 in VMEM.

    x_ref: (TB, 24)    batch-padded input rows (no lane padding on the input)
    w_ref: (136, 384)  [w1p | w2p | w3p] in rows 0..127 (each zero-padded to
                       128x128); biases [b1 | b2 | b3] in row 128; rows
                       129..135 zero (sublane alignment).
    o_ref: (TB, 128)   lane-dense output slab (cols >= 6 are zero)
    """
    x = x_ref[...]
    # Static, sublane/lane-aligned slices of the VMEM view -> zero cost.
    w1 = w_ref[:INPUT_SIZE, 0 * LANE:1 * LANE]              # (24, 128)
    w2 = w_ref[:LANE,       1 * LANE:2 * LANE]               # (128, 128)
    w3 = w_ref[:LANE,       2 * LANE:3 * LANE]               # (128, 128)
    b1 = w_ref[BIAS_ROW:BIAS_ROW + 1, 0 * LANE:1 * LANE]     # (1, 128)
    b2 = w_ref[BIAS_ROW:BIAS_ROW + 1, 1 * LANE:2 * LANE]
    b3 = w_ref[BIAS_ROW:BIAS_ROW + 1, 2 * LANE:3 * LANE]

    h = jnp.dot(x, w1, preferred_element_type=jnp.float32) + b1
    h = jnp.maximum(h, 0.0)
    h = jnp.dot(h, w2, preferred_element_type=jnp.float32) + b2
    h = jnp.maximum(h, 0.0)
    out = jnp.dot(h, w3, preferred_element_type=jnp.float32) + b3
    o_ref[...] = out.astype(o_ref.dtype)


def pack_params(params):
    """Pack weights + biases into ONE (136, 384) f32 buffer.

    Call this ONCE at init / param-update time (hoisted out of the per-forward
    path); the forward only sees the packed buffer."""
    w = jnp.zeros((PACK_ROWS, PACK), jnp.float32)
    for i, (wk, bk) in enumerate((("w1", "b1"), ("w2", "b2"), ("w3", "b3"))):
        wi = params[wk].astype(jnp.float32)
        bi = params[bk].astype(jnp.float32).reshape(-1)
        fi, fo = wi.shape
        w = w.at[:fi, i * LANE:i * LANE + fo].set(wi)
        w = w.at[BIAS_ROW, i * LANE:i * LANE + fo].set(bi)
    return w


def _choose_tile(batch):
    """Pick (TB, B_pad). Single fat step up to 512 rows; for larger rollouts
    an even number of <=512-row steps (balanced across v7x's two TCs)."""
    b8 = _round_up(max(batch, 8), 8)
    if b8 <= MAX_TB:
        tb = b8
    else:
        n_blocks = _round_up(pl.cdiv(b8, MAX_TB), 2)   # even block count
        tb = _round_up(pl.cdiv(b8, n_blocks), 8)
    return tb, _round_up(b8, tb)


@jax.jit
def continuous_policy_forward_pallas(x, w_packed):
    """x: (B, 24) f32. w_packed: (136, 384) f32 from pack_params()."""
    assert x.ndim == 2 and x.shape[1] == INPUT_SIZE, x.shape
    assert w_packed.shape == (PACK_ROWS, PACK), w_packed.shape
    B = x.shape[0]
    TB, B_pad = _choose_tile(B)
    n_blocks = B_pad // TB

    x = x.astype(jnp.float32)
    if B_pad != B:                       # pad only the batch dim
        x = jnp.pad(x, ((0, B_pad - B), (0, 0)))

    # Advisory cost estimate reflecting the padded work actually executed.
    flops = 2 * B_pad * (INPUT_SIZE * LANE + LANE * LANE + LANE * LANE)
    bytes_accessed = 4 * (B_pad * INPUT_SIZE + PACK_ROWS * PACK + B_pad * LANE)

    out_padded = pl.pallas_call(
        mlp_kernel,
        out_shape=jax.ShapeDtypeStruct((B_pad, LANE), jnp.float32),
        grid=(n_blocks,),
        in_specs=[
            # Activations: tiled over the batch grid axis, 24 lanes wide
            # (legal: last block dim equals the full array dim).
            pl.BlockSpec((TB, INPUT_SIZE), lambda i: (i, 0)),
            # Packed weights+biases: constant index_map -> DMA'd once and
            # VMEM-resident across all grid steps.
            pl.BlockSpec((PACK_ROWS, PACK), lambda i: (0, 0)),
        ],
        out_specs=pl.BlockSpec((TB, LANE), lambda i: (i, 0)),
        compiler_params=pltpu.CompilerParams(
            dimension_semantics=("parallel",)),
        cost_estimate=pl.CostEstimate(
            flops=flops, transcendentals=0, bytes_accessed=bytes_accessed),
    )(x, w_packed)

    # Padded rows/lanes never leak: slice back to the logical shape.
    return out_padded[:B, :OUTPUT_SIZE]


def _forward_jnp_packed(x, w_packed):
    """Plain-XLA path operating on the packed buffer (for tiny batches)."""
    w1 = w_packed[:INPUT_SIZE, 0:HIDDEN_SIZE]
    b1 = w_packed[BIAS_ROW, 0:HIDDEN_SIZE]
    w2 = w_packed[:HIDDEN_SIZE, LANE:LANE + HIDDEN_SIZE]
    b2 = w_packed[BIAS_ROW, LANE:LANE + HIDDEN_SIZE]
    w3 = w_packed[:HIDDEN_SIZE, 2 * LANE:2 * LANE + OUTPUT_SIZE]
    b3 = w_packed[BIAS_ROW, 2 * LANE:2 * LANE + OUTPUT_SIZE]
    h = jnp.maximum(x @ w1 + b1, 0.0)
    h = jnp.maximum(h @ w2 + b2, 0.0)
    return h @ w3 + b3


_forward_jnp_packed_jit = jax.jit(_forward_jnp_packed)


def continuous_policy_forward(x, w_packed):
    """Dispatcher: tiny batches (single-state policy queries) use plain XLA
    fusion (kernel dispatch + DMA overhead would dominate); rollout-sized
    batches use the Pallas kernel."""
    if x.shape[0] < SMALL_BATCH:
        return _forward_jnp_packed_jit(x, w_packed)
    return continuous_policy_forward_pallas(x, w_packed)


def init_params(key):
    """Mirror the PyTorch module: weights ~ Normal(0, 0.25); biases use the
    nn.Linear default Uniform(-1/sqrt(fan_in), 1/sqrt(fan_in))."""
    ks = jax.random.split(key, 6)

    def linear(kw, kb, fan_in, fan_out):
        w = 0.25 * jax.random.normal(kw, (fan_in, fan_out), dtype=jnp.float32)
        bound = 1.0 / jnp.sqrt(float(fan_in))
        b = jax.random.uniform(kb, (1, fan_out), dtype=jnp.float32,
                               minval=-bound, maxval=bound)
        return w, b

    w1, b1 = linear(ks[0], ks[1], INPUT_SIZE, HIDDEN_SIZE)
    w2, b2 = linear(ks[2], ks[3], HIDDEN_SIZE, HIDDEN_SIZE)
    w3, b3 = linear(ks[4], ks[5], HIDDEN_SIZE, OUTPUT_SIZE)
    return {"w1": w1, "b1": b1, "w2": w2, "b2": b2, "w3": w3, "b3": b3}


def reference_forward(x, p):
    h = jnp.maximum(x @ p["w1"] + p["b1"], 0.0)
    h = jnp.maximum(h @ p["w2"] + p["b2"], 0.0)
    return h @ p["w3"] + p["b3"]


if __name__ == "__main__":
    key = jax.random.PRNGKey(0)
    k_params, k_x = jax.random.split(key)
    params = init_params(k_params)
    # Packing is done ONCE here (hoisted out of the forward path).
    w_packed = jax.block_until_ready(pack_params(params))

    # --- Small batch (single/few-state policy queries): exercise the kernel
    # directly, then check the dispatcher's tiny-batch XLA bypass too.
    x = jax.random.normal(k_x, (BATCH, INPUT_SIZE), dtype=jnp.float32)
    out = jax.block_until_ready(continuous_policy_forward_pallas(x, w_packed))
    ref = reference_forward(x, params)
    assert out.shape == (BATCH, OUTPUT_SIZE), out.shape
    assert jnp.allclose(out, ref, atol=1e-5, rtol=1e-5), "mismatch (B=8, pallas)"
    out_d = jax.block_until_ready(continuous_policy_forward(x, w_packed))
    assert jnp.allclose(out_d, ref, atol=1e-5, rtol=1e-5), "mismatch (B=8, dispatch)"

    # --- Rollout-sized batch: single fat 304-row grid step.
    x_mid = jax.random.normal(jax.random.PRNGKey(1), (300, INPUT_SIZE),
                              dtype=jnp.float32)
    out_mid = jax.block_until_ready(
        continuous_policy_forward_pallas(x_mid, w_packed))
    ref_mid = reference_forward(x_mid, params)
    assert out_mid.shape == (300, OUTPUT_SIZE), out_mid.shape
    assert jnp.allclose(out_mid, ref_mid, atol=1e-5, rtol=1e-5), "mismatch (B=300)"

    # --- Large rollout: even multi-step grid (4 x 304 rows), weights stay
    # VMEM-resident across steps via the constant index_map.
    x_big = jax.random.normal(jax.random.PRNGKey(2), (1200, INPUT_SIZE),
                              dtype=jnp.float32)
    out_big = jax.block_until_ready(
        continuous_policy_forward_pallas(x_big, w_packed))
    ref_big = reference_forward(x_big, params)
    assert out_big.shape == (1200, OUTPUT_SIZE), out_big.shape
    assert jnp.allclose(out_big, ref_big, atol=1e-5, rtol=1e-5), "mismatch (B=1200)"

    print("KERNEL_OK")
</pallas_src>

<mosaic_0001>
module attributes {stable_mosaic.version = 11 : i64} {
  func.func @mlp_kernel(%arg0: i32, %arg1: memref<8x24xf32, #tpu.memory_space<vmem>>, %arg2: memref<136x384xf32, #tpu.memory_space<vmem>>, %arg3: memref<8x128xf32, #tpu.memory_space<vmem>>) attributes {dimension_semantics = [#tpu.dimension_semantics<parallel>], iteration_bounds = array<i64: 1>, scalar_prefetch = 0 : i64, scratch_operands = 0 : i64, tpu.core_type = #tpu.core_type<tc>, window_params = [{transform_indices = @transform_0, window_bounds = array<i64: 8, 24>}, {pipeline_mode = #tpu.pipeline_mode<synchronous>, transform_indices = @transform_1, window_bounds = array<i64: 136, 384>}, {transform_indices = @transform_2, window_bounds = array<i64: 8, 128>}]} {
    %c0 = arith.constant 0 : index
    %c0_0 = arith.constant 0 : index
    %0 = vector.load %arg1[%c0, %c0_0] : memref<8x24xf32, #tpu.memory_space<vmem>>, vector<8x24xf32>
    %c0_1 = arith.constant 0 : index
    %c0_2 = arith.constant 0 : index
    %1 = vector.load %arg2[%c0_1, %c0_2] : memref<136x384xf32, #tpu.memory_space<vmem>>, vector<24x128xf32>
    %c0_3 = arith.constant 0 : index
    %c128 = arith.constant 128 : index
    %2 = vector.load %arg2[%c0_3, %c128] : memref<136x384xf32, #tpu.memory_space<vmem>>, vector<128x128xf32>
    %c0_4 = arith.constant 0 : index
    %c256 = arith.constant 256 : index
    %3 = vector.load %arg2[%c0_4, %c256] : memref<136x384xf32, #tpu.memory_space<vmem>>, vector<128x128xf32>
    %c128_5 = arith.constant 128 : index
    %c0_6 = arith.constant 0 : index
    %4 = vector.load %arg2[%c128_5, %c0_6] : memref<136x384xf32, #tpu.memory_space<vmem>>, vector<1x128xf32>
    %c128_7 = arith.constant 128 : index
    %c128_8 = arith.constant 128 : index
    %5 = vector.load %arg2[%c128_7, %c128_8] : memref<136x384xf32, #tpu.memory_space<vmem>>, vector<1x128xf32>
    %c128_9 = arith.constant 128 : index
    %c256_10 = arith.constant 256 : index
    %6 = vector.load %arg2[%c128_9, %c256_10] : memref<136x384xf32, #tpu.memory_space<vmem>>, vector<1x128xf32>
    %cst = arith.constant dense<0.000000e+00> : vector<8x128xf32>
    %7 = tpu.matmul %0, %1, %cst {dimension_numbers = #tpu.dot_dimension_numbers<[1], [0], [0], [1], [0, 0, 1, 1], [], []>} : vector<8x24xf32>, vector<24x128xf32>, vector<8x128xf32> -> vector<8x128xf32>
    %8 = vector.broadcast %4 : vector<1x128xf32> to vector<8x128xf32>
    %9 = arith.addf %7, %8 : vector<8x128xf32>
    %cst_11 = arith.constant 0.000000e+00 : f32
    %10 = vector.broadcast %cst_11 : f32 to vector<8x128xf32>
    %11 = arith.maximumf %9, %10 : vector<8x128xf32>
    %cst_12 = arith.constant dense<0.000000e+00> : vector<8x128xf32>
    %12 = tpu.matmul %11, %2, %cst_12 {dimension_numbers = #tpu.dot_dimension_numbers<[1], [0], [0], [1], [0, 0, 1, 1], [], []>} : vector<8x128xf32>, vector<128x128xf32>, vector<8x128xf32> -> vector<8x128xf32>
    %13 = vector.broadcast %5 : vector<1x128xf32> to vector<8x128xf32>
    %14 = arith.addf %12, %13 : vector<8x128xf32>
    %cst_13 = arith.constant 0.000000e+00 : f32
    %15 = vector.broadcast %cst_13 : f32 to vector<8x128xf32>
    %16 = arith.maximumf %14, %15 : vector<8x128xf32>
    %cst_14 = arith.constant dense<0.000000e+00> : vector<8x128xf32>
    %17 = tpu.matmul %16, %3, %cst_14 {dimension_numbers = #tpu.dot_dimension_numbers<[1], [0], [0], [1], [0, 0, 1, 1], [], []>} : vector<8x128xf32>, vector<128x128xf32>, vector<8x128xf32> -> vector<8x128xf32>
    %18 = vector.broadcast %6 : vector<1x128xf32> to vector<8x128xf32>
    %19 = arith.addf %17, %18 : vector<8x128xf32>
    %c0_15 = arith.constant 0 : index
    %c0_16 = arith.constant 0 : index
    %20 = vector.load %arg3[%c0_15, %c0_16] : memref<8x128xf32, #tpu.memory_space<vmem>>, vector<8x128xf32>
    tpu.vector_store %arg3[%c0_15, %c0_16], %19 {strides = array<i32>} : memref<8x128xf32, #tpu.memory_space<vmem>>, vector<8x128xf32>,
    return
  }
  func.func @transform_0(%arg0: i32) -> (i32, i32) {
    %c0_i32 = arith.constant 0 : i32
    %c0_i32_0 = arith.constant 0 : i32
    return %arg0, %c0_i32 : i32, i32
  }
  func.func @transform_1(%arg0: i32) -> (i32, i32) {
    %c0_i32 = arith.constant 0 : i32
    %c0_i32_0 = arith.constant 0 : i32
    %c0_i32_1 = arith.constant 0 : i32
    return %c0_i32, %c0_i32_0 : i32, i32
  }
  func.func @transform_2(%arg0: i32) -> (i32, i32) {
    %c0_i32 = arith.constant 0 : i32
    %c0_i32_0 = arith.constant 0 : i32
    return %arg0, %c0_i32 : i32, i32
  }
}

</mosaic_0001>

<bundles_post_ra>
// kernel: continuous_policy_forward_pallas.1
= control target key start
LH: loop header
LB: loop body
LE: loop exit
PB: predicated region body
PF: predicated region fallthrough
CT: control target
= control target key end

     0   :  { %7 = vsyncpa [#allocation3], 0  ;;  %s645_s0 = inlined_call_operand.hbm [shape: f32[8,24], index: 0, kind: input, shape index: {}]   ;;  %s646_s1 = inlined_call_operand.hbm [shape: f32[136,384], index: 1, kind: input, shape index: {}]   ;;  %s647_s2 = inlined_call_operand.hbm [shape: f32[8,128], index: 2, kind: output, shape index: {}]  }
   0x1   :  { %8 = vsyncpa [#allocation6], 0 }
   0x2   :  { %9 = vsyncpa [#allocation4], 0  ;;  %s559_s9 = smov [#allocation2]   ;;  %s560_s11 = smov [#allocation5]  }
   0x3   :  { %s16_s10 = sshll.u32 %s559_s9, 4  ;;  %s25_s12 = sshll.u32 %s560_s11, 4  ;;  %s17_s10 = int_to_ptr.vmem [resolvable:$true] %s16_s10  ;;  %s582_s12 = int_to_ptr.vmem [resolvable:$true] %s25_s12 }
   0x4   :  { %s487_s15 = scalar_lea.hbm %s645_s0, 128 }
   0x5   :  { %p488_p0 = scmp.ne.s32.totalorder %s645_s0, %s487_s15  ;;  %p491_p1 = scmp.lt.u32.totalorder %s487_s15, %s645_s0 }
   0x7   :  { %p493_p2 = pnand %p491_p1, %p488_p0 }
   0x9   :  { %496 = shalt.err (!%p493_p2)
}
   0xa   :  { %s497_s20 = scalar_lea.vmem %s17_s10, 128  ;;  %p502_p4 = scmp.lt.s32.totalorder %s17_s10, %s17_s10 }
   0xb   :  { %p498_p3 = scmp.ne.s32.totalorder %s17_s10, %s497_s20  ;;  %p503_p5 = scmp.lt.s32.totalorder %s497_s20, %s497_s20 }
   0xd   :  { %p504_p6 = por %p503_p5, %p502_p4 }
   0xf   :  { %p505_p7 = pnand %p504_p6, %p498_p3 }
  0x11   :  { %508 = shalt.err (!%p505_p7)
}
  0x12   :  { %19 = dma.hbm_to_vmem [thread:$0]  %s645_s0, 128, %s17_s10, [#allocation3]  }
  0x13   :  { %s509_s25 = scalar_lea.hbm %s646_s1, 6528 }
  0x14   :  { %p510_p8 = scmp.ne.s32.totalorder %s646_s1, %s509_s25  ;;  %p513_p9 = scmp.lt.u32.totalorder %s509_s25, %s646_s1 }
  0x16   :  { %p515_p10 = pnand %p513_p9, %p510_p8 }
  0x18   :  { %518 = shalt.err (!%p515_p10)
}
  0x19   :  { %s519_s30 = scalar_lea.vmem %s582_s12, 6528  ;;  %p524_p12 = scmp.lt.s32.totalorder %s582_s12, %s582_s12 }
  0x1a   :  { %p520_p11 = scmp.ne.s32.totalorder %s582_s12, %s519_s30  ;;  %p525_p13 = scmp.lt.s32.totalorder %s519_s30, %s519_s30 }
  0x1c   :  { %p526_p0 = por %p525_p13, %p524_p12 }
  0x1e   :  { %p527_p1 = pnand %p526_p0, %p520_p11 }
  0x20   :  { %530 = shalt.err (!%p527_p1)
}
  0x21   :  { %s561_s0 = smov 384   ;;  %s562_s3 = smov 24  }
  0x22   :  { %31 = dma.hbm_to_vmem [thread:$0]  %s646_s1, 6528, %s582_s12, [#allocation6], %s561_s0, %s561_s0, %s562_s3  }
  0x23   :  { %553 = dma.done.wait [#allocation3], 128  }
  0x24   :  { %554 = vsyncadd [#allocation3], 4294967168 }
  0x25   :  { %555 = dma.done.wait [#allocation6], 6528  }
  0x26   :  { %556 = vsyncadd [#allocation6], 4294960768  ;;  %v563_v0 = vmov 0.0|0.0   ;;  %vm564_vm0 = vmmov 0   ;;  %v565_v1 = vmov 0.0   ;;  %v39_v2 = vld [vmem:[#allocation5] sm:$0xff] }
  0x27   :  { %428 = vmatprep.subr.bf16.mxu0 %v563_v0  ;;  %355 = vmatprep.mubr.msk.f32.mxu0 %vm564_vm0, %v565_v1  ;;  %v40_v3 = vld [vmem:[#allocation5 + $0x18] sm:$0xff]  ;;  %v42_v5 = vld [vmem:[#allocation5 + $0x8] sm:$0xff]  ;;  %v43_v6 = vld [vmem:[#allocation5 + $0x20] sm:$0xff]  ;;  %vm77_vm1 = vcmask 195584   ;;  %s566_s1 = smov [#allocation7]  }
  0x28   :  { %431 = vmatprep.subr.bf16.mxu1 %v563_v0  ;;  %390 = vmatprep.mubr.msk.f32.mxu1 %vm564_vm0, %v565_v1  ;;  %v429_v4 = vpack.c.bf16 %v40_v3, %v39_v2  ;;  %v432_v7 = vpack.c.bf16 %v43_v6, %v42_v5  ;;  %v44_v8 = vld [vmem:[#allocation5 + $0x38] sm:$0xff]  ;;  %v45_v9 = vld [vmem:[#allocation5 + $0x50] sm:$0xff]  ;;  %v46_v13 = vld [vmem:[#allocation5 + $0x68] sm:$0xff]  ;;  %s300_s6 = sshll.u32 %s566_s1, 4  ;;  %s301_s6 = int_to_ptr.vmem [resolvable:$true] %s300_s6 }
  0x29   :  { %v41_v10 = vld [vmem:[#allocation5 + $0x30] sm:$0xff]  ;;  %v435_v11 = vpack.c.bf16 %v45_v9, %v44_v8  ;;  %v38_v12 = vld [vmem:[#allocation2] sm:$0xff]  ;;  %v47_v14 = vld [vmem:[#allocation5 + $0x80] sm:$0xff]  ;;  %s531_s7 = scalar_lea.vmem %s301_s6, 128  ;;  %p536_p3 = scmp.lt.s32.totalorder %s301_s6, %s301_s6 }
  0x2a   :  { %430 = vmatpush3.bf16.msra.mxu0 %v429_v4  ;;  %433 = vmatpush3.bf16.msra.mxu1 %v432_v7  ;;  %v438_v15 = vpack.c.bf16 %v47_v14, %v46_v13  ;;  %v48_v16 = vld [vmem:[#allocation5 + $0x98] sm:$0xff]  ;;  %v49_v17 = vld [vmem:[#allocation5 + $0xb0] sm:$0xff]  ;;  %v50_v19 = vld [vmem:[#allocation5 + $0xc8] sm:$0xff]  ;;  %p532_p2 = scmp.ne.s32.totalorder %s301_s6, %s531_s7  ;;  %p537_p4 = scmp.lt.s32.totalorder %s531_s7, %s531_s7 }
  0x2b   :  { %353 = vmatprep.subr.mxu0 %v565_v1  ;;  %434 = vmatprep.subr.bf16.mxu1 %v563_v0  ;;  %v441_v18 = vpack.c.bf16 %v49_v17, %v48_v16  ;;  %v51_v20 = vld [vmem:[#allocation5 + $0xe0] sm:$0xff]  ;;  %v52_v22 = vld [vmem:[#allocation5 + $0xf8] sm:$0xff]  ;;  %v53_v23 = vld [vmem:[#allocation5 + $0x110] sm:$0xff] }
  0x2c   :  { %v444_v21 = vpack.c.bf16 %v51_v20, %v50_v19  ;;  %v447_v24 = vpack.c.bf16 %v53_v23, %v52_v22  ;;  %v54_v25 = vld [vmem:[#allocation5 + $0x128] sm:$0xff]  ;;  %v55_v26 = vld [vmem:[#allocation5 + $0x140] sm:$0xff]  ;;  %v56_v28 = vld [vmem:[#allocation5 + $0x158] sm:$0xff]  ;;  %p538_p5 = por %p537_p4, %p536_p3 }
  0x2d   :  { %v450_v27 = vpack.c.bf16 %v55_v26, %v54_v25  ;;  %v57_v29 = vld [vmem:[#allocation5 + $0x170] sm:$0xff]  ;;  %v59_v32 = vld [vmem:[#allocation5 + $0x28] sm:$0xff]  ;;  %v60_v33 = vld [vmem:[#allocation5 + $0x40] sm:$0xff] }
  0x2e   :  { %354 = vmatpush3.msra.mxu0 %v41_v10  ;;  %436 = vmatpush3.bf16.msra.mxu1 %v435_v11  ;;  %v453_v30 = vpack.c.bf16 %v57_v29, %v56_v28  ;;  %v58_v31 = vld [vmem:[#allocation5 + $0x10] sm:$0xff]  ;;  %v61_v35 = vld [vmem:[#allocation5 + $0x58] sm:$0xff]  ;;  %v63_v38 = vld [vmem:[#allocation5 + $0x88] sm:$0xff]  ;;  %p539_p6 = pnand %p538_p5, %p532_p2 }
  0x2f   :  { %356 = vmatmul.mubr.msk.f32.vlgmr.msra.gmra.mrb[0].mxu0 %vm77_vm1, %v38_v12  ;;  %437 = vmatprep.subr.bf16.mxu1 %v563_v0  ;;  %v456_v34 = vpack.c.bf16 %v59_v32, %v58_v31  ;;  %v459_v36 = vpack.c.bf16 %v61_v35, %v60_v33  ;;  %v62_v37 = vld [vmem:[#allocation5 + $0x70] sm:$0xff]  ;;  %v64_v40 = vld [vmem:[#allocation5 + $0xa0] sm:$0xff]  ;;  %v65_v41 = vld [vmem:[#allocation5 + $0xb8] sm:$0xff] }
  0x30   :  { %455 = vmatprep.subr.bf16.mxu0 %v563_v0  ;;  %425 = vmatprep.mubr.msk.f32.mxu0 %vm564_vm0, %v565_v1  ;;  %v462_v39 = vpack.c.bf16 %v63_v38, %v62_v37  ;;  %v465_v42 = vpack.c.bf16 %v65_v41, %v64_v40  ;;  %v66_v43 = vld [vmem:[#allocation5 + $0xd0] sm:$0xff]  ;;  %v67_v44 = vld [vmem:[#allocation5 + $0xe8] sm:$0xff]  ;;  %v68_v46 = vld [vmem:[#allocation5 + $0x100] sm:$0xff] }
  0x31   :  { %457 = vmatpush3.bf16.msra.mxu0 %v456_v34  ;;  %v468_v45 = vpack.c.bf16 %v67_v44, %v66_v43  ;;  %v69_v47 = vld [vmem:[#allocation5 + $0x118] sm:$0xff]  ;;  %v70_v49 = vld [vmem:[#allocation5 + $0x130] sm:$0xff]  ;;  %v71_v50 = vld [vmem:[#allocation5 + $0x148] sm:$0xff] }
  0x32   :  { %439 = vmatpush3.bf16.msra.mxu1 %v438_v15  ;;  %458 = vmatprep.subr.bf16.mxu0 %v563_v0  ;;  %v471_v48 = vpack.c.bf16 %v69_v47, %v68_v46  ;;  %v474_v51 = vpack.c.bf16 %v71_v50, %v70_v49  ;;  %v74_v52 = vld [vmem:[#allocation5 + $0x180] ss:$0 sm:$0xff]  ;;  %v73_v58 = vld [vmem:[#allocation5 + $0x178] sm:$0xff]  ;;  %v75_v60 = vld [vmem:[#allocation5 + $0x188] ss:$0 sm:$0xff] }
  0x33   :  { %440 = vmatprep.subr.bf16.mxu1 %v563_v0  ;;  %v72_v57 = vld [vmem:[#allocation5 + $0x160] sm:$0xff]  ;;  %v76_v2 = vld [vmem:[#allocation5 + $0x190] ss:$0 sm:$0xff] }
  0x34   :  { %v477_v59 = vpack.c.bf16 %v73_v58, %v72_v57 }
  0x35   :  { %460 = vmatpush3.bf16.msra.mxu0 %v459_v36 }
  0x36   :  { %442 = vmatpush3.bf16.msra.mxu1 %v441_v18  ;;  %461 = vmatprep.subr.bf16.mxu0 %v563_v0 }
  0x37   :  { %443 = vmatprep.subr.bf16.mxu1 %v563_v0 }
  0x39   :  { %463 = vmatpush3.bf16.msra.mxu0 %v462_v39 }
  0x3a   :  { %445 = vmatpush3.bf16.msra.mxu1 %v444_v21  ;;  %464 = vmatprep.subr.bf16.mxu0 %v563_v0 }
  0x3b   :  { %446 = vmatprep.subr.bf16.mxu1 %v563_v0 }
  0x3d   :  { %466 = vmatpush3.bf16.msra.mxu0 %v465_v42 }
  0x3e   :  { %448 = vmatpush3.bf16.msra.mxu1 %v447_v24  ;;  %467 = vmatprep.subr.bf16.mxu0 %v563_v0 }
  0x3f   :  { %449 = vmatprep.subr.bf16.mxu1 %v563_v0 }
  0x41   :  { %469 = vmatpush3.bf16.msra.mxu0 %v468_v45 }
  0x42   :  { %451 = vmatpush3.bf16.msra.mxu1 %v450_v27  ;;  %470 = vmatprep.subr.bf16.mxu0 %v563_v0 }
  0x43   :  { %452 = vmatprep.subr.bf16.mxu1 %v563_v0 }
  0x45   :  { %472 = vmatpush3.bf16.msra.mxu0 %v471_v48 }
  0x46   :  { %454 = vmatpush3.bf16.msra.mxu1 %v453_v30  ;;  %473 = vmatprep.subr.bf16.mxu0 %v563_v0 }
  0x49   :  { %475 = vmatpush3.bf16.msra.mxu0 %v474_v51 }
  0x4a   :  { %476 = vmatprep.subr.bf16.mxu0 %v563_v0 }
  0x4d   :  { %478 = vmatpush3.bf16.msra.mxu0 %v477_v59 }
 0x102   :  { %v147_v53 = vpop.f32.mrb[0].mxu0 }
 0x103   :  { %v148_v54 = vadd.f32 %v147_v53, %v74_v52  ;;  %v357_v55 = vpop.f32.mrb[1].mxu0 }
 0x105   :  { %v151_v56 = vmax.f32 %v148_v54, 0.0 }
 0x107   :  { %391 = vmatmul.mubr.f32.vlgmr.msra.gmra.mrb[0].mxu1 %v151_v56 }
 0x1da   :  { %v218_v61 = vpop.f32.mrb[0].mxu1 }
 0x1db   :  { %v219_v62 = vadd.f32 %v218_v61, %v75_v60  ;;  %v392_v63 = vpop.f32.mrb[1].mxu1 }
 0x1dd   :  { %v222_v1 = vmax.f32 %v219_v62, 0.0 }
 0x1df   :  { %426 = vmatmul.mubr.f32.vlgmr.msra.gmra.mrb[2].mxu0 %v222_v1 }
 0x2b2   :  { %v289_v0 = vpop.f32.mrb[2].mxu0 }
 0x2b3   :  { %v290_v3 = vadd.f32 %v289_v0, %v76_v2  ;;  %v427_v4 = vpop.f32.mrb[3].mxu0 }
 0x2b5   :  { %293 = vst [vmem:[#allocation7] sm:$0xff] %v290_v3 }
 0x2b6   :  { %542 = shalt.err (!%p539_p6)
}
 0x2b7   :  { %s543_s10 = scalar_lea.hbm %s647_s2, 128 }
 0x2b8   :  { %p544_p7 = scmp.ne.s32.totalorder %s647_s2, %s543_s10  ;;  %p547_p8 = scmp.lt.u32.totalorder %s543_s10, %s647_s2 }
 0x2ba   :  { %p549_p9 = pnand %p547_p8, %p544_p7 }
 0x2bc   :  { %552 = shalt.err (!%p549_p9)
}
 0x2bd   :  { %303 = dma.vmem_to_hbm [thread:$0]  %s301_s6, 128, %s647_s2, [#allocation4]  }
 0x2be   :  { %557 = dma.done.wait [#allocation4], 128  }
 0x2bf   :  { %558 = vsyncadd [#allocation4], 4294967168 }
 0x2c0   :  { %307 = vsyncpa [#allocation3], 1 }
 0x2c1   :  { %308 = vsyncpa [#allocation6], 1 }
 0x2c2   :  { %309 = vsyncpa [#allocation4], 1 }

</bundles_post_ra>
